<compile_context>
chip_gen: v5e
topology: v5e:2x2
jax: 0.10.0
libtpu: 0.0.40
codegen_flags: <defaults>
</compile_context>

<pallas_src>
import functools
import math

import jax
import jax.numpy as jnp
from jax.experimental import pallas as pl
from jax.experimental.pallas import tpu as pltpu


def _spatial_attention_kernel(x_ref, rhs_ref, o_ref, lhs_scr, *, k_size, pad, nb):
    # x_ref  : VMEM (NB, C, H, W)     NB batch elements per grid step
    # rhs_ref: VMEM (2*k*W, W)        banded conv-weight matrix (built wrapper-side)
    # o_ref  : VMEM (NB, 1, H, W)
    # lhs_scr: VMEM (NB*H, 2*k*W)     im2row scratch, batches stacked along M
    _, c, h, w = x_ref.shape
    inv_c = 1.0 / c

    for b in range(nb):                              # static unroll over batch slots
        xb = x_ref[b]                                # (C, H, W)
        avg = jnp.sum(xb, axis=0) * inv_c            # channel mean (H, W)
        mx = jnp.max(xb, axis=0)                     # channel max  (H, W)
        row0 = b * h

        # Paste the two pooled maps at the 2*k (channel, dh) column offsets.
        # Only the vertical-padding boundary rows (never overwritten) are
        # zeroed; everything else is fully overwritten each step.
        for ci, feat in enumerate((avg, mx)):
            for dh in range(k_size):
                col = (ci * k_size + dh) * w
                h_lo = max(0, pad - dh)
                h_hi = min(h, h + pad - dh)
                if h_hi <= h_lo:
                    lhs_scr[row0:row0 + h, col:col + w] = jnp.zeros((h, w), jnp.float32)
                    continue
                if h_lo > 0:
                    lhs_scr[row0:row0 + h_lo, col:col + w] = (
                        jnp.zeros((h_lo, w), jnp.float32))
                if h_hi < h:
                    lhs_scr[row0 + h_hi:row0 + h, col:col + w] = (
                        jnp.zeros((h - h_hi, w), jnp.float32))
                src_lo = h_lo + dh - pad
                lhs_scr[row0 + h_lo:row0 + h_hi, col:col + w] = (
                    feat[src_lo:src_lo + (h_hi - h_lo), :])

    # Entire 2-channel kxk convolution for all NB images: one MXU matmul.
    #   (NB*H, 2*k*W) @ (2*k*W, W) -> (NB*H, W)
    z = jnp.dot(lhs_scr[...], rhs_ref[...], preferred_element_type=jnp.float32)

    # sigmoid: exp on EUP, reciprocal via pl.reciprocal (EUP), no VPU divide.
    sig = pl.reciprocal(1.0 + jnp.exp(-z))           # (NB*H, W)

    for b in range(nb):
        o_ref[b, 0] = sig[b * h:(b + 1) * h, :]


def _build_banded_rhs(conv_weight, width, k_size, pad):
    """Fold the (1, 2, k, k) conv weight into a (2*k*W, W) banded matrix.

    Horizontal zero-padding is folded into the band (parameter-only work):
      RHS[(ci*k + dh)*W + c_in, w_out] = weight[0, ci, dh, c_in - w_out + pad]
                                         if 0 <= c_in - w_out + pad < k else 0
    """
    wt = conv_weight[0].astype(jnp.float32)              # (2, k, k)
    c_in = jnp.arange(width)[:, None]                    # (W, 1)
    w_out = jnp.arange(width)[None, :]                   # (1, W)
    dw = c_in - w_out + pad                              # (W, W)
    valid = (dw >= 0) & (dw < k_size)
    dw_c = jnp.clip(dw, 0, k_size - 1)
    band = jnp.where(valid[None, None], wt[:, :, dw_c], 0.0)   # (2, k, W, W)
    return band.reshape(2 * k_size * width, width)


def spatial_attention_forward(x, conv_weight, *, k_size=7):
    n, c, h, w = x.shape
    pad = 3 if k_size == 7 else 1
    kdim = 2 * k_size * w                                 # contraction length

    # Stack NB batch elements per grid step so M = NB*H approaches 128 rows.
    nb = max(1, min(n, pl.cdiv(128, h)))
    n_pad = pl.cdiv(n, nb) * nb
    if n_pad != n:
        x = jnp.pad(x, ((0, n_pad - n), (0, 0), (0, 0), (0, 0)))
    n_steps = n_pad // nb

    rhs = _build_banded_rhs(conv_weight, w, k_size, pad)  # (kdim, W)

    # Explicit scoped-VMEM budget (double-buffered x/out/rhs blocks + scratch).
    block_bytes = 4 * (2 * nb * c * h * w + 2 * nb * h * w + 2 * kdim * w
                       + nb * h * kdim)
    vmem_limit = int(min(max(2 * block_bytes, 16 << 20), 48 << 20))

    kernel = functools.partial(_spatial_attention_kernel,
                               k_size=k_size, pad=pad, nb=nb)
    out = pl.pallas_call(
        kernel,
        out_shape=jax.ShapeDtypeStruct((n_pad, 1, h, w), jnp.float32),
        grid=(n_steps,),
        in_specs=[
            pl.BlockSpec((nb, c, h, w), lambda i: (i, 0, 0, 0)),   # NB images/step
            pl.BlockSpec((kdim, w), lambda i: (0, 0)),             # banded weights
        ],
        out_specs=pl.BlockSpec((nb, 1, h, w), lambda i: (i, 0, 0, 0)),
        scratch_shapes=[pltpu.VMEM((nb * h, kdim), jnp.float32)],
        compiler_params=pltpu.CompilerParams(
            dimension_semantics=("parallel",),
            vmem_limit_bytes=vmem_limit),
    )(x, rhs)
    return out[:n]


def spatial_attention_reference(x, conv_weight):
    """Pure-JAX mirror of SpatialAttention.forward (high-precision reference)."""
    avg = jnp.mean(x, axis=1, keepdims=True)
    mx = jnp.max(x, axis=1, keepdims=True)
    cat = jnp.concatenate([avg, mx], axis=1)              # (N, 2, H, W)
    pad = 3 if conv_weight.shape[-1] == 7 else 1
    y = jax.lax.conv_general_dilated(
        cat, conv_weight, window_strides=(1, 1),
        padding=((pad, pad), (pad, pad)),
        dimension_numbers=("NCHW", "OIHW", "NCHW"),
        precision=jax.lax.Precision.HIGHEST)
    return jax.nn.sigmoid(y)


if __name__ == "__main__":
    # Small but representative shapes: batch=2, channels=4, 16x16 feature map.
    N, C, H, W = 2, 4, 16, 16
    K_SIZE = 7

    key = jax.random.PRNGKey(0)
    k_w, k_x = jax.random.split(key)

    # Conv2d(2, 1, 7, bias=False) default init: U(-b, b), b = 1/sqrt(fan_in).
    fan_in = 2 * K_SIZE * K_SIZE
    bound = 1.0 / math.sqrt(fan_in)
    conv_weight = jax.random.uniform(k_w, (1, 2, K_SIZE, K_SIZE), jnp.float32,
                                     minval=-bound, maxval=bound)
    x = jax.random.normal(k_x, (N, C, H, W), dtype=jnp.float32)

    out = jax.block_until_ready(spatial_attention_forward(x, conv_weight, k_size=K_SIZE))
    ref = spatial_attention_reference(x, conv_weight)
    assert out.shape == (N, 1, H, W) and out.dtype == jnp.float32
    # Tolerance covers default (single-pass bf16) MXU precision of the conv
    # matmul; reference is HIGHEST precision.
    assert jnp.allclose(out, ref, atol=2e-3, rtol=2e-3), float(jnp.max(jnp.abs(out - ref)))
    print("KERNEL_OK")
</pallas_src>

<mosaic_0001>
module attributes {stable_mosaic.version = 11 : i64} {
  func.func @_spatial_attention_kernel(%arg0: i32, %arg1: memref<2x4x16x16xf32, #tpu.memory_space<vmem>>, %arg2: memref<224x16xf32, #tpu.memory_space<vmem>>, %arg3: memref<2x1x16x16xf32, #tpu.memory_space<vmem>>, %arg4: memref<32x224xf32, #tpu.memory_space<vmem>>) attributes {dimension_semantics = [#tpu.dimension_semantics<parallel>], iteration_bounds = array<i64: 1>, scalar_prefetch = 0 : i64, scratch_operands = 1 : i64, tpu.core_type = #tpu.core_type<tc>, window_params = [{transform_indices = @transform_0, window_bounds = array<i64: 2, 4, 16, 16>}, {pipeline_mode = #tpu.pipeline_mode<synchronous>, transform_indices = @transform_1, window_bounds = array<i64: 224, 16>}, {transform_indices = @transform_2, window_bounds = array<i64: 2, 1, 16, 16>}]} {
    %c0 = arith.constant 0 : index
    %c0_0 = arith.constant 0 : index
    %c0_1 = arith.constant 0 : index
    %c0_2 = arith.constant 0 : index
    %0 = vector.load %arg1[%c0, %c0_0, %c0_1, %c0_2] : memref<2x4x16x16xf32, #tpu.memory_space<vmem>>, vector<1x4x16x16xf32>
    %1 = vector.shape_cast %0 : vector<1x4x16x16xf32> to vector<4x16x16xf32>
    %cst = arith.constant dense<0.000000e+00> : vector<16x16xf32>
    %2 = vector.multi_reduction <add>, %1, %cst [0] : vector<4x16x16xf32> to vector<16x16xf32>
    %cst_3 = arith.constant 2.500000e-01 : f32
    %3 = vector.broadcast %cst_3 : f32 to vector<16x16xf32>
    %4 = arith.mulf %2, %3 : vector<16x16xf32>
    %cst_4 = arith.constant dense<0xFF800000> : vector<16x16xf32>
    %5 = vector.multi_reduction <maximumf>, %1, %cst_4 [0] : vector<4x16x16xf32> to vector<16x16xf32>
    %cst_5 = arith.constant 0.000000e+00 : f32
    %6 = vector.broadcast %cst_5 : f32 to vector<3x16xf32>
    %c0_6 = arith.constant 0 : index
    %c0_7 = arith.constant 0 : index
    %7 = vector.load %arg4[%c0_6, %c0_7] : memref<32x224xf32, #tpu.memory_space<vmem>>, vector<3x16xf32>
    tpu.vector_store %arg4[%c0_6, %c0_7], %6 {strides = array<i32>} : memref<32x224xf32, #tpu.memory_space<vmem>>, vector<3x16xf32>,
    %8 = vector.extract_strided_slice %4 {offsets = [0, 0], sizes = [13, 16], strides = [1, 1]} : vector<16x16xf32> to vector<13x16xf32>
    %c3 = arith.constant 3 : index
    %c0_8 = arith.constant 0 : index
    %9 = vector.load %arg4[%c3, %c0_8] : memref<32x224xf32, #tpu.memory_space<vmem>>, vector<13x16xf32>
    tpu.vector_store %arg4[%c3, %c0_8], %8 {strides = array<i32>} : memref<32x224xf32, #tpu.memory_space<vmem>>, vector<13x16xf32>,
    %cst_9 = arith.constant 0.000000e+00 : f32
    %10 = vector.broadcast %cst_9 : f32 to vector<2x16xf32>
    %c0_10 = arith.constant 0 : index
    %c16 = arith.constant 16 : index
    %11 = vector.load %arg4[%c0_10, %c16] : memref<32x224xf32, #tpu.memory_space<vmem>>, vector<2x16xf32>
    tpu.vector_store %arg4[%c0_10, %c16], %10 {strides = array<i32>} : memref<32x224xf32, #tpu.memory_space<vmem>>, vector<2x16xf32>,
    %12 = vector.extract_strided_slice %4 {offsets = [0, 0], sizes = [14, 16], strides = [1, 1]} : vector<16x16xf32> to vector<14x16xf32>
    %c2 = arith.constant 2 : index
    %c16_11 = arith.constant 16 : index
    %13 = vector.load %arg4[%c2, %c16_11] : memref<32x224xf32, #tpu.memory_space<vmem>>, vector<14x16xf32>
    tpu.vector_store %arg4[%c2, %c16_11], %12 {strides = array<i32>} : memref<32x224xf32, #tpu.memory_space<vmem>>, vector<14x16xf32>,
    %cst_12 = arith.constant 0.000000e+00 : f32
    %14 = vector.broadcast %cst_12 : f32 to vector<1x16xf32>
    %c0_13 = arith.constant 0 : index
    %c32 = arith.constant 32 : index
    %15 = vector.load %arg4[%c0_13, %c32] : memref<32x224xf32, #tpu.memory_space<vmem>>, vector<1x16xf32>
    tpu.vector_store %arg4[%c0_13, %c32], %14 {strides = array<i32>} : memref<32x224xf32, #tpu.memory_space<vmem>>, vector<1x16xf32>,
    %16 = vector.extract_strided_slice %4 {offsets = [0, 0], sizes = [15, 16], strides = [1, 1]} : vector<16x16xf32> to vector<15x16xf32>
    %c1 = arith.constant 1 : index
    %c32_14 = arith.constant 32 : index
    %17 = vector.load %arg4[%c1, %c32_14] : memref<32x224xf32, #tpu.memory_space<vmem>>, vector<15x16xf32>
    tpu.vector_store %arg4[%c1, %c32_14], %16 {strides = array<i32>} : memref<32x224xf32, #tpu.memory_space<vmem>>, vector<15x16xf32>,
    %c0_15 = arith.constant 0 : index
    %c48 = arith.constant 48 : index
    %18 = vector.load %arg4[%c0_15, %c48] : memref<32x224xf32, #tpu.memory_space<vmem>>, vector<16x16xf32>
    tpu.vector_store %arg4[%c0_15, %c48], %4 {strides = array<i32>} : memref<32x224xf32, #tpu.memory_space<vmem>>, vector<16x16xf32>,
    %cst_16 = arith.constant 0.000000e+00 : f32
    %19 = vector.broadcast %cst_16 : f32 to vector<1x16xf32>
    %c15 = arith.constant 15 : index
    %c64 = arith.constant 64 : index
    %20 = vector.load %arg4[%c15, %c64] : memref<32x224xf32, #tpu.memory_space<vmem>>, vector<1x16xf32>
    tpu.vector_store %arg4[%c15, %c64], %19 {strides = array<i32>} : memref<32x224xf32, #tpu.memory_space<vmem>>, vector<1x16xf32>,
    %21 = vector.extract_strided_slice %4 {offsets = [1, 0], sizes = [15, 16], strides = [1, 1]} : vector<16x16xf32> to vector<15x16xf32>
    %c0_17 = arith.constant 0 : index
    %c64_18 = arith.constant 64 : index
    %22 = vector.load %arg4[%c0_17, %c64_18] : memref<32x224xf32, #tpu.memory_space<vmem>>, vector<15x16xf32>
    tpu.vector_store %arg4[%c0_17, %c64_18], %21 {strides = array<i32>} : memref<32x224xf32, #tpu.memory_space<vmem>>, vector<15x16xf32>,
    %cst_19 = arith.constant 0.000000e+00 : f32
    %23 = vector.broadcast %cst_19 : f32 to vector<2x16xf32>
    %c14 = arith.constant 14 : index
    %c80 = arith.constant 80 : index
    %24 = vector.load %arg4[%c14, %c80] : memref<32x224xf32, #tpu.memory_space<vmem>>, vector<2x16xf32>
    tpu.vector_store %arg4[%c14, %c80], %23 {strides = array<i32>} : memref<32x224xf32, #tpu.memory_space<vmem>>, vector<2x16xf32>,
    %25 = vector.extract_strided_slice %4 {offsets = [2, 0], sizes = [14, 16], strides = [1, 1]} : vector<16x16xf32> to vector<14x16xf32>
    %c0_20 = arith.constant 0 : index
    %c80_21 = arith.constant 80 : index
    %26 = vector.load %arg4[%c0_20, %c80_21] : memref<32x224xf32, #tpu.memory_space<vmem>>, vector<14x16xf32>
    tpu.vector_store %arg4[%c0_20, %c80_21], %25 {strides = array<i32>} : memref<32x224xf32, #tpu.memory_space<vmem>>, vector<14x16xf32>,
    %cst_22 = arith.constant 0.000000e+00 : f32
    %27 = vector.broadcast %cst_22 : f32 to vector<3x16xf32>
    %c13 = arith.constant 13 : index
    %c96 = arith.constant 96 : index
    %28 = vector.load %arg4[%c13, %c96] : memref<32x224xf32, #tpu.memory_space<vmem>>, vector<3x16xf32>
    tpu.vector_store %arg4[%c13, %c96], %27 {strides = array<i32>} : memref<32x224xf32, #tpu.memory_space<vmem>>, vector<3x16xf32>,
    %29 = vector.extract_strided_slice %4 {offsets = [3, 0], sizes = [13, 16], strides = [1, 1]} : vector<16x16xf32> to vector<13x16xf32>
    %c0_23 = arith.constant 0 : index
    %c96_24 = arith.constant 96 : index
    %30 = vector.load %arg4[%c0_23, %c96_24] : memref<32x224xf32, #tpu.memory_space<vmem>>, vector<13x16xf32>
    tpu.vector_store %arg4[%c0_23, %c96_24], %29 {strides = array<i32>} : memref<32x224xf32, #tpu.memory_space<vmem>>, vector<13x16xf32>,
    %cst_25 = arith.constant 0.000000e+00 : f32
    %31 = vector.broadcast %cst_25 : f32 to vector<3x16xf32>
    %c0_26 = arith.constant 0 : index
    %c112 = arith.constant 112 : index
    %32 = vector.load %arg4[%c0_26, %c112] : memref<32x224xf32, #tpu.memory_space<vmem>>, vector<3x16xf32>
    tpu.vector_store %arg4[%c0_26, %c112], %31 {strides = array<i32>} : memref<32x224xf32, #tpu.memory_space<vmem>>, vector<3x16xf32>,
    %33 = vector.extract_strided_slice %5 {offsets = [0, 0], sizes = [13, 16], strides = [1, 1]} : vector<16x16xf32> to vector<13x16xf32>
    %c3_27 = arith.constant 3 : index
    %c112_28 = arith.constant 112 : index
    %34 = vector.load %arg4[%c3_27, %c112_28] : memref<32x224xf32, #tpu.memory_space<vmem>>, vector<13x16xf32>
    tpu.vector_store %arg4[%c3_27, %c112_28], %33 {strides = array<i32>} : memref<32x224xf32, #tpu.memory_space<vmem>>, vector<13x16xf32>,
    %cst_29 = arith.constant 0.000000e+00 : f32
    %35 = vector.broadcast %cst_29 : f32 to vector<2x16xf32>
    %c0_30 = arith.constant 0 : index
    %c128 = arith.constant 128 : index
    %36 = vector.load %arg4[%c0_30, %c128] : memref<32x224xf32, #tpu.memory_space<vmem>>, vector<2x16xf32>
    tpu.vector_store %arg4[%c0_30, %c128], %35 {strides = array<i32>} : memref<32x224xf32, #tpu.memory_space<vmem>>, vector<2x16xf32>,
    %37 = vector.extract_strided_slice %5 {offsets = [0, 0], sizes = [14, 16], strides = [1, 1]} : vector<16x16xf32> to vector<14x16xf32>
    %c2_31 = arith.constant 2 : index
    %c128_32 = arith.constant 128 : index
    %38 = vector.load %arg4[%c2_31, %c128_32] : memref<32x224xf32, #tpu.memory_space<vmem>>, vector<14x16xf32>
    tpu.vector_store %arg4[%c2_31, %c128_32], %37 {strides = array<i32>} : memref<32x224xf32, #tpu.memory_space<vmem>>, vector<14x16xf32>,
    %cst_33 = arith.constant 0.000000e+00 : f32
    %39 = vector.broadcast %cst_33 : f32 to vector<1x16xf32>
    %c0_34 = arith.constant 0 : index
    %c144 = arith.constant 144 : index
    %40 = vector.load %arg4[%c0_34, %c144] : memref<32x224xf32, #tpu.memory_space<vmem>>, vector<1x16xf32>
    tpu.vector_store %arg4[%c0_34, %c144], %39 {strides = array<i32>} : memref<32x224xf32, #tpu.memory_space<vmem>>, vector<1x16xf32>,
    %41 = vector.extract_strided_slice %5 {offsets = [0, 0], sizes = [15, 16], strides = [1, 1]} : vector<16x16xf32> to vector<15x16xf32>
    %c1_35 = arith.constant 1 : index
    %c144_36 = arith.constant 144 : index
    %42 = vector.load %arg4[%c1_35, %c144_36] : memref<32x224xf32, #tpu.memory_space<vmem>>, vector<15x16xf32>
    tpu.vector_store %arg4[%c1_35, %c144_36], %41 {strides = array<i32>} : memref<32x224xf32, #tpu.memory_space<vmem>>, vector<15x16xf32>,
    %c0_37 = arith.constant 0 : index
    %c160 = arith.constant 160 : index
    %43 = vector.load %arg4[%c0_37, %c160] : memref<32x224xf32, #tpu.memory_space<vmem>>, vector<16x16xf32>
    tpu.vector_store %arg4[%c0_37, %c160], %5 {strides = array<i32>} : memref<32x224xf32, #tpu.memory_space<vmem>>, vector<16x16xf32>,
    %cst_38 = arith.constant 0.000000e+00 : f32
    %44 = vector.broadcast %cst_38 : f32 to vector<1x16xf32>
    %c15_39 = arith.constant 15 : index
    %c176 = arith.constant 176 : index
    %45 = vector.load %arg4[%c15_39, %c176] : memref<32x224xf32, #tpu.memory_space<vmem>>, vector<1x16xf32>
    tpu.vector_store %arg4[%c15_39, %c176], %44 {strides = array<i32>} : memref<32x224xf32, #tpu.memory_space<vmem>>, vector<1x16xf32>,
    %46 = vector.extract_strided_slice %5 {offsets = [1, 0], sizes = [15, 16], strides = [1, 1]} : vector<16x16xf32> to vector<15x16xf32>
    %c0_40 = arith.constant 0 : index
    %c176_41 = arith.constant 176 : index
    %47 = vector.load %arg4[%c0_40, %c176_41] : memref<32x224xf32, #tpu.memory_space<vmem>>, vector<15x16xf32>
    tpu.vector_store %arg4[%c0_40, %c176_41], %46 {strides = array<i32>} : memref<32x224xf32, #tpu.memory_space<vmem>>, vector<15x16xf32>,
    %cst_42 = arith.constant 0.000000e+00 : f32
    %48 = vector.broadcast %cst_42 : f32 to vector<2x16xf32>
    %c14_43 = arith.constant 14 : index
    %c192 = arith.constant 192 : index
    %49 = vector.load %arg4[%c14_43, %c192] : memref<32x224xf32, #tpu.memory_space<vmem>>, vector<2x16xf32>
    tpu.vector_store %arg4[%c14_43, %c192], %48 {strides = array<i32>} : memref<32x224xf32, #tpu.memory_space<vmem>>, vector<2x16xf32>,
    %50 = vector.extract_strided_slice %5 {offsets = [2, 0], sizes = [14, 16], strides = [1, 1]} : vector<16x16xf32> to vector<14x16xf32>
    %c0_44 = arith.constant 0 : index
    %c192_45 = arith.constant 192 : index
    %51 = vector.load %arg4[%c0_44, %c192_45] : memref<32x224xf32, #tpu.memory_space<vmem>>, vector<14x16xf32>
    tpu.vector_store %arg4[%c0_44, %c192_45], %50 {strides = array<i32>} : memref<32x224xf32, #tpu.memory_space<vmem>>, vector<14x16xf32>,
    %cst_46 = arith.constant 0.000000e+00 : f32
    %52 = vector.broadcast %cst_46 : f32 to vector<3x16xf32>
    %c13_47 = arith.constant 13 : index
    %c208 = arith.constant 208 : index
    %53 = vector.load %arg4[%c13_47, %c208] : memref<32x224xf32, #tpu.memory_space<vmem>>, vector<3x16xf32>
    tpu.vector_store %arg4[%c13_47, %c208], %52 {strides = array<i32>} : memref<32x224xf32, #tpu.memory_space<vmem>>, vector<3x16xf32>,
    %54 = vector.extract_strided_slice %5 {offsets = [3, 0], sizes = [13, 16], strides = [1, 1]} : vector<16x16xf32> to vector<13x16xf32>
    %c0_48 = arith.constant 0 : index
    %c208_49 = arith.constant 208 : index
    %55 = vector.load %arg4[%c0_48, %c208_49] : memref<32x224xf32, #tpu.memory_space<vmem>>, vector<13x16xf32>
    tpu.vector_store %arg4[%c0_48, %c208_49], %54 {strides = array<i32>} : memref<32x224xf32, #tpu.memory_space<vmem>>, vector<13x16xf32>,
    %c1_50 = arith.constant 1 : index
    %c0_51 = arith.constant 0 : index
    %c0_52 = arith.constant 0 : index
    %c0_53 = arith.constant 0 : index
    %56 = vector.load %arg1[%c1_50, %c0_51, %c0_52, %c0_53] : memref<2x4x16x16xf32, #tpu.memory_space<vmem>>, vector<1x4x16x16xf32>
    %57 = vector.shape_cast %56 : vector<1x4x16x16xf32> to vector<4x16x16xf32>
    %cst_54 = arith.constant dense<0.000000e+00> : vector<16x16xf32>
    %58 = vector.multi_reduction <add>, %57, %cst_54 [0] : vector<4x16x16xf32> to vector<16x16xf32>
    %cst_55 = arith.constant 2.500000e-01 : f32
    %59 = vector.broadcast %cst_55 : f32 to vector<16x16xf32>
    %60 = arith.mulf %58, %59 : vector<16x16xf32>
    %cst_56 = arith.constant dense<0xFF800000> : vector<16x16xf32>
    %61 = vector.multi_reduction <maximumf>, %57, %cst_56 [0] : vector<4x16x16xf32> to vector<16x16xf32>
    %cst_57 = arith.constant 0.000000e+00 : f32
    %62 = vector.broadcast %cst_57 : f32 to vector<3x16xf32>
    %c16_58 = arith.constant 16 : index
    %c0_59 = arith.constant 0 : index
    %63 = vector.load %arg4[%c16_58, %c0_59] : memref<32x224xf32, #tpu.memory_space<vmem>>, vector<3x16xf32>
    tpu.vector_store %arg4[%c16_58, %c0_59], %62 {strides = array<i32>} : memref<32x224xf32, #tpu.memory_space<vmem>>, vector<3x16xf32>,
    %64 = vector.extract_strided_slice %60 {offsets = [0, 0], sizes = [13, 16], strides = [1, 1]} : vector<16x16xf32> to vector<13x16xf32>
    %c19 = arith.constant 19 : index
    %c0_60 = arith.constant 0 : index
    %65 = vector.load %arg4[%c19, %c0_60] : memref<32x224xf32, #tpu.memory_space<vmem>>, vector<13x16xf32>
    tpu.vector_store %arg4[%c19, %c0_60], %64 {strides = array<i32>} : memref<32x224xf32, #tpu.memory_space<vmem>>, vector<13x16xf32>,
    %cst_61 = arith.constant 0.000000e+00 : f32
    %66 = vector.broadcast %cst_61 : f32 to vector<2x16xf32>
    %c16_62 = arith.constant 16 : index
    %c16_63 = arith.constant 16 : index
    %67 = vector.load %arg4[%c16_62, %c16_63] : memref<32x224xf32, #tpu.memory_space<vmem>>, vector<2x16xf32>
    tpu.vector_store %arg4[%c16_62, %c16_63], %66 {strides = array<i32>} : memref<32x224xf32, #tpu.memory_space<vmem>>, vector<2x16xf32>,
    %68 = vector.extract_strided_slice %60 {offsets = [0, 0], sizes = [14, 16], strides = [1, 1]} : vector<16x16xf32> to vector<14x16xf32>
    %c18 = arith.constant 18 : index
    %c16_64 = arith.constant 16 : index
    %69 = vector.load %arg4[%c18, %c16_64] : memref<32x224xf32, #tpu.memory_space<vmem>>, vector<14x16xf32>
    tpu.vector_store %arg4[%c18, %c16_64], %68 {strides = array<i32>} : memref<32x224xf32, #tpu.memory_space<vmem>>, vector<14x16xf32>,
    %cst_65 = arith.constant 0.000000e+00 : f32
    %70 = vector.broadcast %cst_65 : f32 to vector<1x16xf32>
    %c16_66 = arith.constant 16 : index
    %c32_67 = arith.constant 32 : index
    %71 = vector.load %arg4[%c16_66, %c32_67] : memref<32x224xf32, #tpu.memory_space<vmem>>, vector<1x16xf32>
    tpu.vector_store %arg4[%c16_66, %c32_67], %70 {strides = array<i32>} : memref<32x224xf32, #tpu.memory_space<vmem>>, vector<1x16xf32>,
    %72 = vector.extract_strided_slice %60 {offsets = [0, 0], sizes = [15, 16], strides = [1, 1]} : vector<16x16xf32> to vector<15x16xf32>
    %c17 = arith.constant 17 : index
    %c32_68 = arith.constant 32 : index
    %73 = vector.load %arg4[%c17, %c32_68] : memref<32x224xf32, #tpu.memory_space<vmem>>, vector<15x16xf32>
    tpu.vector_store %arg4[%c17, %c32_68], %72 {strides = array<i32>} : memref<32x224xf32, #tpu.memory_space<vmem>>, vector<15x16xf32>,
    %c16_69 = arith.constant 16 : index
    %c48_70 = arith.constant 48 : index
    %74 = vector.load %arg4[%c16_69, %c48_70] : memref<32x224xf32, #tpu.memory_space<vmem>>, vector<16x16xf32>
    tpu.vector_store %arg4[%c16_69, %c48_70], %60 {strides = array<i32>} : memref<32x224xf32, #tpu.memory_space<vmem>>, vector<16x16xf32>,
    %cst_71 = arith.constant 0.000000e+00 : f32
    %75 = vector.broadcast %cst_71 : f32 to vector<1x16xf32>
    %c31 = arith.constant 31 : index
    %c64_72 = arith.constant 64 : index
    %76 = vector.load %arg4[%c31, %c64_72] : memref<32x224xf32, #tpu.memory_space<vmem>>, vector<1x16xf32>
    tpu.vector_store %arg4[%c31, %c64_72], %75 {strides = array<i32>} : memref<32x224xf32, #tpu.memory_space<vmem>>, vector<1x16xf32>,
    %77 = vector.extract_strided_slice %60 {offsets = [1, 0], sizes = [15, 16], strides = [1, 1]} : vector<16x16xf32> to vector<15x16xf32>
    %c16_73 = arith.constant 16 : index
    %c64_74 = arith.constant 64 : index
    %78 = vector.load %arg4[%c16_73, %c64_74] : memref<32x224xf32, #tpu.memory_space<vmem>>, vector<15x16xf32>
    tpu.vector_store %arg4[%c16_73, %c64_74], %77 {strides = array<i32>} : memref<32x224xf32, #tpu.memory_space<vmem>>, vector<15x16xf32>,
    %cst_75 = arith.constant 0.000000e+00 : f32
    %79 = vector.broadcast %cst_75 : f32 to vector<2x16xf32>
    %c30 = arith.constant 30 : index
    %c80_76 = arith.constant 80 : index
    %80 = vector.load %arg4[%c30, %c80_76] : memref<32x224xf32, #tpu.memory_space<vmem>>, vector<2x16xf32>
    tpu.vector_store %arg4[%c30, %c80_76], %79 {strides = array<i32>} : memref<32x224xf32, #tpu.memory_space<vmem>>, vector<2x16xf32>,
    %81 = vector.extract_strided_slice %60 {offsets = [2, 0], sizes = [14, 16], strides = [1, 1]} : vector<16x16xf32> to vector<14x16xf32>
    %c16_77 = arith.constant 16 : index
    %c80_78 = arith.constant 80 : index
    %82 = vector.load %arg4[%c16_77, %c80_78] : memref<32x224xf32, #tpu.memory_space<vmem>>, vector<14x16xf32>
    tpu.vector_store %arg4[%c16_77, %c80_78], %81 {strides = array<i32>} : memref<32x224xf32, #tpu.memory_space<vmem>>, vector<14x16xf32>,
    %cst_79 = arith.constant 0.000000e+00 : f32
    %83 = vector.broadcast %cst_79 : f32 to vector<3x16xf32>
    %c29 = arith.constant 29 : index
    %c96_80 = arith.constant 96 : index
    %84 = vector.load %arg4[%c29, %c96_80] : memref<32x224xf32, #tpu.memory_space<vmem>>, vector<3x16xf32>
    tpu.vector_store %arg4[%c29, %c96_80], %83 {strides = array<i32>} : memref<32x224xf32, #tpu.memory_space<vmem>>, vector<3x16xf32>,
    %85 = vector.extract_strided_slice %60 {offsets = [3, 0], sizes = [13, 16], strides = [1, 1]} : vector<16x16xf32> to vector<13x16xf32>
    %c16_81 = arith.constant 16 : index
    %c96_82 = arith.constant 96 : index
    %86 = vector.load %arg4[%c16_81, %c96_82] : memref<32x224xf32, #tpu.memory_space<vmem>>, vector<13x16xf32>
    tpu.vector_store %arg4[%c16_81, %c96_82], %85 {strides = array<i32>} : memref<32x224xf32, #tpu.memory_space<vmem>>, vector<13x16xf32>,
    %cst_83 = arith.constant 0.000000e+00 : f32
    %87 = vector.broadcast %cst_83 : f32 to vector<3x16xf32>
    %c16_84 = arith.constant 16 : index
    %c112_85 = arith.constant 112 : index
    %88 = vector.load %arg4[%c16_84, %c112_85] : memref<32x224xf32, #tpu.memory_space<vmem>>, vector<3x16xf32>
    tpu.vector_store %arg4[%c16_84, %c112_85], %87 {strides = array<i32>} : memref<32x224xf32, #tpu.memory_space<vmem>>, vector<3x16xf32>,
    %89 = vector.extract_strided_slice %61 {offsets = [0, 0], sizes = [13, 16], strides = [1, 1]} : vector<16x16xf32> to vector<13x16xf32>
    %c19_86 = arith.constant 19 : index
    %c112_87 = arith.constant 112 : index
    %90 = vector.load %arg4[%c19_86, %c112_87] : memref<32x224xf32, #tpu.memory_space<vmem>>, vector<13x16xf32>
    tpu.vector_store %arg4[%c19_86, %c112_87], %89 {strides = array<i32>} : memref<32x224xf32, #tpu.memory_space<vmem>>, vector<13x16xf32>,
    %cst_88 = arith.constant 0.000000e+00 : f32
    %91 = vector.broadcast %cst_88 : f32 to vector<2x16xf32>
    %c16_89 = arith.constant 16 : index
    %c128_90 = arith.constant 128 : index
    %92 = vector.load %arg4[%c16_89, %c128_90] : memref<32x224xf32, #tpu.memory_space<vmem>>, vector<2x16xf32>
    tpu.vector_store %arg4[%c16_89, %c128_90], %91 {strides = array<i32>} : memref<32x224xf32, #tpu.memory_space<vmem>>, vector<2x16xf32>,
    %93 = vector.extract_strided_slice %61 {offsets = [0, 0], sizes = [14, 16], strides = [1, 1]} : vector<16x16xf32> to vector<14x16xf32>
    %c18_91 = arith.constant 18 : index
    %c128_92 = arith.constant 128 : index
    %94 = vector.load %arg4[%c18_91, %c128_92] : memref<32x224xf32, #tpu.memory_space<vmem>>, vector<14x16xf32>
    tpu.vector_store %arg4[%c18_91, %c128_92], %93 {strides = array<i32>} : memref<32x224xf32, #tpu.memory_space<vmem>>, vector<14x16xf32>,
    %cst_93 = arith.constant 0.000000e+00 : f32
    %95 = vector.broadcast %cst_93 : f32 to vector<1x16xf32>
    %c16_94 = arith.constant 16 : index
    %c144_95 = arith.constant 144 : index
    %96 = vector.load %arg4[%c16_94, %c144_95] : memref<32x224xf32, #tpu.memory_space<vmem>>, vector<1x16xf32>
    tpu.vector_store %arg4[%c16_94, %c144_95], %95 {strides = array<i32>} : memref<32x224xf32, #tpu.memory_space<vmem>>, vector<1x16xf32>,
    %97 = vector.extract_strided_slice %61 {offsets = [0, 0], sizes = [15, 16], strides = [1, 1]} : vector<16x16xf32> to vector<15x16xf32>
    %c17_96 = arith.constant 17 : index
    %c144_97 = arith.constant 144 : index
    %98 = vector.load %arg4[%c17_96, %c144_97] : memref<32x224xf32, #tpu.memory_space<vmem>>, vector<15x16xf32>
    tpu.vector_store %arg4[%c17_96, %c144_97], %97 {strides = array<i32>} : memref<32x224xf32, #tpu.memory_space<vmem>>, vector<15x16xf32>,
    %c16_98 = arith.constant 16 : index
    %c160_99 = arith.constant 160 : index
    %99 = vector.load %arg4[%c16_98, %c160_99] : memref<32x224xf32, #tpu.memory_space<vmem>>, vector<16x16xf32>
    tpu.vector_store %arg4[%c16_98, %c160_99], %61 {strides = array<i32>} : memref<32x224xf32, #tpu.memory_space<vmem>>, vector<16x16xf32>,
    %cst_100 = arith.constant 0.000000e+00 : f32
    %100 = vector.broadcast %cst_100 : f32 to vector<1x16xf32>
    %c31_101 = arith.constant 31 : index
    %c176_102 = arith.constant 176 : index
    %101 = vector.load %arg4[%c31_101, %c176_102] : memref<32x224xf32, #tpu.memory_space<vmem>>, vector<1x16xf32>
    tpu.vector_store %arg4[%c31_101, %c176_102], %100 {strides = array<i32>} : memref<32x224xf32, #tpu.memory_space<vmem>>, vector<1x16xf32>,
    %102 = vector.extract_strided_slice %61 {offsets = [1, 0], sizes = [15, 16], strides = [1, 1]} : vector<16x16xf32> to vector<15x16xf32>
    %c16_103 = arith.constant 16 : index
    %c176_104 = arith.constant 176 : index
    %103 = vector.load %arg4[%c16_103, %c176_104] : memref<32x224xf32, #tpu.memory_space<vmem>>, vector<15x16xf32>
    tpu.vector_store %arg4[%c16_103, %c176_104], %102 {strides = array<i32>} : memref<32x224xf32, #tpu.memory_space<vmem>>, vector<15x16xf32>,
    %cst_105 = arith.constant 0.000000e+00 : f32
    %104 = vector.broadcast %cst_105 : f32 to vector<2x16xf32>
    %c30_106 = arith.constant 30 : index
    %c192_107 = arith.constant 192 : index
    %105 = vector.load %arg4[%c30_106, %c192_107] : memref<32x224xf32, #tpu.memory_space<vmem>>, vector<2x16xf32>
    tpu.vector_store %arg4[%c30_106, %c192_107], %104 {strides = array<i32>} : memref<32x224xf32, #tpu.memory_space<vmem>>, vector<2x16xf32>,
    %106 = vector.extract_strided_slice %61 {offsets = [2, 0], sizes = [14, 16], strides = [1, 1]} : vector<16x16xf32> to vector<14x16xf32>
    %c16_108 = arith.constant 16 : index
    %c192_109 = arith.constant 192 : index
    %107 = vector.load %arg4[%c16_108, %c192_109] : memref<32x224xf32, #tpu.memory_space<vmem>>, vector<14x16xf32>
    tpu.vector_store %arg4[%c16_108, %c192_109], %106 {strides = array<i32>} : memref<32x224xf32, #tpu.memory_space<vmem>>, vector<14x16xf32>,
    %cst_110 = arith.constant 0.000000e+00 : f32
    %108 = vector.broadcast %cst_110 : f32 to vector<3x16xf32>
    %c29_111 = arith.constant 29 : index
    %c208_112 = arith.constant 208 : index
    %109 = vector.load %arg4[%c29_111, %c208_112] : memref<32x224xf32, #tpu.memory_space<vmem>>, vector<3x16xf32>
    tpu.vector_store %arg4[%c29_111, %c208_112], %108 {strides = array<i32>} : memref<32x224xf32, #tpu.memory_space<vmem>>, vector<3x16xf32>,
    %110 = vector.extract_strided_slice %61 {offsets = [3, 0], sizes = [13, 16], strides = [1, 1]} : vector<16x16xf32> to vector<13x16xf32>
    %c16_113 = arith.constant 16 : index
    %c208_114 = arith.constant 208 : index
    %111 = vector.load %arg4[%c16_113, %c208_114] : memref<32x224xf32, #tpu.memory_space<vmem>>, vector<13x16xf32>
    tpu.vector_store %arg4[%c16_113, %c208_114], %110 {strides = array<i32>} : memref<32x224xf32, #tpu.memory_space<vmem>>, vector<13x16xf32>,
    %c0_115 = arith.constant 0 : index
    %c0_116 = arith.constant 0 : index
    %112 = vector.load %arg4[%c0_115, %c0_116] : memref<32x224xf32, #tpu.memory_space<vmem>>, vector<32x224xf32>
    %c0_117 = arith.constant 0 : index
    %c0_118 = arith.constant 0 : index
    %113 = vector.load %arg2[%c0_117, %c0_118] : memref<224x16xf32, #tpu.memory_space<vmem>>, vector<224x16xf32>
    %cst_119 = arith.constant dense<0.000000e+00> : vector<32x16xf32>
    %114 = tpu.matmul %112, %113, %cst_119 {dimension_numbers = #tpu.dot_dimension_numbers<[1], [0], [0], [1], [0, 0, 1, 1], [], []>} : vector<32x224xf32>, vector<224x16xf32>, vector<32x16xf32> -> vector<32x16xf32>
    %cst_120 = arith.constant 0.000000e+00 : f32
    %115 = vector.broadcast %cst_120 : f32 to vector<32x16xf32>
    %116 = arith.subf %115, %114 : vector<32x16xf32>
    %117 = math.exp %116 : vector<32x16xf32>
    %cst_121 = arith.constant 1.000000e+00 : f32
    %118 = vector.broadcast %cst_121 : f32 to vector<32x16xf32>
    %119 = arith.addf %118, %117 : vector<32x16xf32>
    %120 = tpu.reciprocal %119 : vector<32x16xf32> -> vector<32x16xf32>
    %121 = vector.extract_strided_slice %120 {offsets = [0, 0], sizes = [16, 16], strides = [1, 1]} : vector<32x16xf32> to vector<16x16xf32>
    %c0_122 = arith.constant 0 : index
    %c0_123 = arith.constant 0 : index
    %c0_124 = arith.constant 0 : index
    %c0_125 = arith.constant 0 : index
    %122 = vector.load %arg3[%c0_122, %c0_123, %c0_124, %c0_125] : memref<2x1x16x16xf32, #tpu.memory_space<vmem>>, vector<1x1x16x16xf32>
    %123 = vector.shape_cast %122 : vector<1x1x16x16xf32> to vector<16x16xf32>
    %124 = vector.shape_cast %121 : vector<16x16xf32> to vector<1x1x16x16xf32>
    tpu.vector_store %arg3[%c0_122, %c0_123, %c0_124, %c0_125], %124 {strides = array<i32>} : memref<2x1x16x16xf32, #tpu.memory_space<vmem>>, vector<1x1x16x16xf32>,
    %125 = vector.extract_strided_slice %120 {offsets = [16, 0], sizes = [16, 16], strides = [1, 1]} : vector<32x16xf32> to vector<16x16xf32>
    %c1_126 = arith.constant 1 : index
    %c0_127 = arith.constant 0 : index
    %c0_128 = arith.constant 0 : index
    %c0_129 = arith.constant 0 : index
    %126 = vector.load %arg3[%c1_126, %c0_127, %c0_128, %c0_129] : memref<2x1x16x16xf32, #tpu.memory_space<vmem>>, vector<1x1x16x16xf32>
    %127 = vector.shape_cast %126 : vector<1x1x16x16xf32> to vector<16x16xf32>
    %128 = vector.shape_cast %125 : vector<16x16xf32> to vector<1x1x16x16xf32>
    tpu.vector_store %arg3[%c1_126, %c0_127, %c0_128, %c0_129], %128 {strides = array<i32>} : memref<2x1x16x16xf32, #tpu.memory_space<vmem>>, vector<1x1x16x16xf32>,
    return
  }
  func.func @transform_0(%arg0: i32) -> (i32, i32, i32, i32) {
    %c0_i32 = arith.constant 0 : i32
    %c0_i32_0 = arith.constant 0 : i32
    %c0_i32_1 = arith.constant 0 : i32
    %c0_i32_2 = arith.constant 0 : i32
    return %arg0, %c0_i32, %c0_i32_0, %c0_i32_1 : i32, i32, i32, i32
  }
  func.func @transform_1(%arg0: i32) -> (i32, i32) {
    %c0_i32 = arith.constant 0 : i32
    %c0_i32_0 = arith.constant 0 : i32
    %c0_i32_1 = arith.constant 0 : i32
    return %c0_i32, %c0_i32_0 : i32, i32
  }
  func.func @transform_2(%arg0: i32) -> (i32, i32, i32, i32) {
    %c0_i32 = arith.constant 0 : i32
    %c0_i32_0 = arith.constant 0 : i32
    %c0_i32_1 = arith.constant 0 : i32
    %c0_i32_2 = arith.constant 0 : i32
    return %arg0, %c0_i32, %c0_i32_0, %c0_i32_1 : i32, i32, i32, i32
  }
}

</mosaic_0001>

<bundles_post_ra>
// kernel: tpu_custom_call.1
= control target key start
LH: loop header
LB: loop body
LE: loop exit
PB: predicated region body
PF: predicated region fallthrough
CT: control target
= control target key end

     0   :  { %vm1263_vm0 = vcmask 130048   ;;  %s1249_s0 = inlined_call_operand.vmem [shape: f32[2,4,16,16], index: 0, kind: input, shape index: {}]   ;;  %s1250_s1 = inlined_call_operand.vmem [shape: f32[224,16], index: 1, kind: input, shape index: {}]   ;;  %s1251_s2 = inlined_call_operand.hbm [shape: f32[2,1,16,16], index: 2, kind: output, shape index: {}]  }
   0x1   :  { %v12_v0 = vld [vmem:[%s1249_s0] sm:$0xff]  ;;  %v13_v1 = vld [vmem:[%s1249_s0 + $0x8] sm:$0xff]  ;;  %v14_v2 = vld [vmem:[%s1249_s0 + $0x10] sm:$0xff] }
   0x2   :  { %v15_v3 = vld [vmem:[%s1249_s0 + $0x18] sm:$0xff]  ;;  %v16_v4 = vld [vmem:[%s1249_s0 + $0x20] sm:$0xff]  ;;  %v17_v5 = vld [vmem:[%s1249_s0 + $0x28] sm:$0xff]  ;;  %v22_v6 = vsel %vm1263_vm0, %v14_v2, 0.0  ;;  %v28_v7 = vsel %vm1263_vm0, %v13_v1, 0.0  ;;  %v37_v8 = vsel %vm1263_vm0, %v12_v0, -inf }
   0x3   :  { %v18_v9 = vld [vmem:[%s1249_s0 + $0x30] sm:$0xff]  ;;  %v19_v10 = vld [vmem:[%s1249_s0 + $0x38] sm:$0xff]  ;;  %v29_v11 = vsel %vm1263_vm0, %v15_v3, 0.0  ;;  %v38_v12 = vsel %vm1263_vm0, %v14_v2, -inf  ;;  %v39_v13 = vsel %vm1263_vm0, %v16_v4, -inf  ;;  %v44_v14 = vsel %vm1263_vm0, %v13_v1, -inf }
   0x4   :  { %v40_v15 = vmax.f32 %v37_v8, %v39_v13  ;;  %v41_v16 = vsel %vm1263_vm0, %v18_v9, -inf  ;;  %v45_v17 = vsel %vm1263_vm0, %v15_v3, -inf  ;;  %v46_v18 = vsel %vm1263_vm0, %v17_v5, -inf }
   0x5   :  { %v42_v19 = vmax.f32 %v38_v12, %v41_v16  ;;  %v47_v20 = vmax.f32 %v44_v14, %v46_v18  ;;  %v48_v21 = vsel %vm1263_vm0, %v19_v10, -inf  ;;  %v21_v22 = vsel %vm1263_vm0, %v12_v0, 0.0 }
   0x6   :  { %7 = vsyncpa [#allocation4], 0  ;;  %v49_v23 = vmax.f32 %v45_v17, %v48_v21  ;;  %v23_v24 = vadd.f32 %v22_v6, %v21_v22  ;;  %v24_v25 = vsel %vm1263_vm0, %v16_v4, 0.0  ;;  %v26_v27 = vsel %vm1263_vm0, %v18_v9, 0.0  ;;  %s734_s25 = smov 32   ;;  %s735_s26 = smov 16  }
   0x7   :  { %v797_v26 = vmax.f32 %v40_v15, %v42_v19  ;;  %v30_v28 = vadd.f32 %v29_v11, %v28_v7  ;;  %v31_v29 = vsel %vm1263_vm0, %v17_v5, 0.0  ;;  %v33_v32 = vsel %vm1263_vm0, %v19_v10, 0.0  ;;  %v641_v47 = vld [vmem:[%s1249_s0 + $0x40] sm:$0xff]  ;;  %v643_v48 = vld [vmem:[%s1249_s0 + $0x50] sm:$0xff]  ;;  %s736_s3 = smov 64   ;;  %s737_s4 = smov 48  }
   0x8   :  { %v801_v30 = vmax.f32 %v47_v20, %v49_v23  ;;  %v25_v31 = vadd.f32 %v24_v25, %v23_v24  ;;  %vm82_vm1 = vcmask 1040384   ;;  %vm66_vm2 = vcmask 1041408   ;;  %v645_v52 = vld [vmem:[%s1249_s0 + $0x60] sm:$0xff]  ;;  %v642_v53 = vld [vmem:[%s1249_s0 + $0x48] sm:$0xff]  ;;  %v644_v54 = vld [vmem:[%s1249_s0 + $0x58] sm:$0xff]  ;;  %s738_s13 = smov 96  }
   0x9   :  { %v182_v33 = vrot.slane %v797_v26, 7  ;;  %v32_v34 = vadd.f32 %v31_v29, %v30_v28  ;;  %v253_v49 = vsel %vm1263_vm0, %v641_v47, 0.0  ;;  %v254_v50 = vsel %vm1263_vm0, %v643_v48, 0.0  ;;  %v647_v59 = vld [vmem:[%s1249_s0 + $0x70] sm:$0xff]  ;;  %v646_v62 = vld [vmem:[%s1249_s0 + $0x68] sm:$0xff]  ;;  %v648_v6 = vld [vmem:[%s1249_s0 + $0x78] sm:$0xff] }
   0xa   :  { %v183_v35 = vrot.slane %v801_v30, 7  ;;  %v27_v36 = vadd.f32 %v26_v27, %v25_v31  ;;  %196 = vrot.lane.b32.xlu2 %v801_v30, %s734_s25  ;;  %v205_v55 = vrot.slane %v801_v30, 1  ;;  %v255_v56 = vadd.f32 %v254_v50, %v253_v49  ;;  %s739_s18 = smov 80   ;;  %s740_s0 = smov 112  }
   0xb   :  { %v34_v37 = vadd.f32 %v33_v32, %v32_v34  ;;  %v256_v58 = vsel %vm1263_vm0, %v645_v52, 0.0  ;;  %v260_v60 = vsel %vm1263_vm0, %v642_v53, 0.0  ;;  %v261_v61 = vsel %vm1263_vm0, %v644_v54, 0.0  ;;  %s629_s28 = sshll.u32 %s1251_s2, 4  ;;  %s743_s29 = smov 128   ;;  %s630_s28 = int_to_ptr.hbm [resolvable:$true] %s629_s28 }
   0xc   :  { %v184_v38 = vsel %vm82_vm1, %v182_v33, %v183_v35  ;;  %v811_v39 = vmul.f32 0.25, %v27_v36  ;;  %v157_v63 = vrot.slane %v797_v26, 5  ;;  %v257_v0 = vadd.f32 %v256_v58, %v255_v56  ;;  %s744_s30 = smov 8  }
   0xd   :  { %187 = vrot.lane.b32.xlu1 %v184_v38, %s735_s26  ;;  %v814_v40 = vmul.f32 0.25, %v34_v37  ;;  %v158_v2 = vrot.slane %v801_v30, 5  ;;  %v258_v3 = vsel %vm1263_vm0, %v647_v59, 0.0  ;;  %v262_v4 = vadd.f32 %v261_v61, %v260_v60 }
   0xe   :  { %v67_v41 = vrot.slane %v811_v39, 6  ;;  %v83_v45 = vrot.slane %v811_v39, 7  ;;  %vm55_vm3 = vcmask 1042432   ;;  %v263_v5 = vsel %vm1263_vm0, %v646_v62, 0.0 }
   0xf   :  { %v68_v42 = vrot.slane %v814_v40, 6  ;;  %v109_v44 = vrot.slane %v814_v40, 1  ;;  %v84_v46 = vrot.slane %v814_v40, 7  ;;  %v141_v57 = vrot.slane %v814_v40, 3 }
  0x10   :  { %v125_v1 = vrot.slane %v814_v40, 2  ;;  %v259_v7 = vadd.f32 %v258_v3, %v257_v0  ;;  %v233_v8 = vrot.slane %v801_v30, 3  ;;  %v159_v9 = vsel %vm55_vm3, %v157_v63, %v158_v2 }
  0x11   :  { %v69_v43 = vsel %vm66_vm2, %v67_v41, %v68_v42  ;;  %v85_v51 = vsel %vm82_vm1, %v83_v45, %v84_v46  ;;  %v264_v10 = vadd.f32 %v263_v5, %v262_v4  ;;  %v265_v11 = vsel %vm1263_vm0, %v648_v6, 0.0 }
  0x12   :  { %72 = vrot.lane.b32.xlu0 %v69_v43, %s735_s26  ;;  %113 = vrot.lane.b32.xlu2 %v109_v44, %s736_s3  ;;  %v888_v12 = vmul.f32 0.25, %v259_v7  ;;  %v219_v13 = vrot.slane %v801_v30, 2  ;;  %v269_v16 = vsel %vm1263_vm0, %v641_v47, -inf  ;;  %v270_v18 = vsel %vm1263_vm0, %v643_v48, -inf }
  0x13   :  { %v266_v14 = vadd.f32 %v265_v11, %v264_v10  ;;  %v271_v19 = vsel %vm1263_vm0, %v645_v52, -inf  ;;  %v273_v20 = vsel %vm1263_vm0, %v647_v59, -inf  ;;  %v276_v21 = vsel %vm1263_vm0, %v642_v53, -inf }
  0x14   :  { %v306_v15 = vrot.slane %v888_v12, 7  ;;  %v277_v22 = vsel %vm1263_vm0, %v644_v54, -inf  ;;  %v278_v23 = vsel %vm1263_vm0, %v646_v62, -inf  ;;  %v280_v24 = vsel %vm1263_vm0, %v648_v6, -inf }
  0x15   :  { %98 = vrot.lane.b32.xlu1 %v814_v40, %s737_s4  ;;  %v896_v17 = vmul.f32 0.25, %v266_v14  ;;  %v294_v25 = vrot.slane %v888_v12, 6  ;;  %v272_v27 = vmax.f32 %v269_v16, %v271_v19  ;;  %v274_v28 = vmax.f32 %v270_v18, %v273_v20  ;;  %v462_v19 = vld [vmem:[%s1250_s1 + $0x78] sm:$0xff]  ;;  %v461_v20 = vld [vmem:[%s1250_s1 + $0x70] sm:$0xff] }
  0x16   :  { %v326_v29 = vrot.slane %v888_v12, 1  ;;  %v279_v32 = vmax.f32 %v276_v21, %v278_v23  ;;  %v281_v34 = vmax.f32 %v277_v22, %v280_v24  ;;  %vm107_vm4 = vcmask 1046528   ;;  %653 = vmatpush.msra.mxu2 %v462_v19  ;;  %488 = vmatpush.msra.mxu0 %v462_v19  ;;  %v459_v21 = vld [vmem:[%s1250_s1 + $0x60] sm:$0xff]  ;;  %v458_v24 = vld [vmem:[%s1250_s1 + $0x58] sm:$0xff] }
  0x17   :  { %v327_v31 = vrot.slane %v896_v17, 1  ;;  %v911_v35 = vmax.f32 %v272_v27, %v274_v28  ;;  %v350_v46 = vrot.slane %v888_v12, 3  ;;  %v351_v47 = vrot.slane %v896_v17, 3  ;;  %v473_v27 = vld [vmem:[%s1250_s1 + $0xd0] sm:$0xff]  ;;  %v456_v28 = vld [vmem:[%s1250_s1 + $0x48] sm:$0xff] }
  0x18   :  { %v915_v37 = vmax.f32 %v279_v32, %v281_v34  ;;  %vm139_vm5 = vcmask 1044480   ;;  %v338_v50 = vrot.slane %v888_v12, 2  ;;  %vm123_vm6 = vcmask 1045504   ;;  %654 = vmatpush.msra.mxu2 %v461_v20  ;;  %489 = vmatpush.msra.mxu0 %v461_v20  ;;  %v455_v32 = vld [vmem:[%s1250_s1 + $0x40] sm:$0xff] }
  0x19   :  { %v328_v36 = vsel %vm107_vm4, %v326_v29, %v327_v31  ;;  %v384_v38 = vrot.slane %v911_v35, 7  ;;  %v404_v42 = vrot.slane %v911_v35, 1  ;;  %v352_v49 = vsel %vm139_vm5, %v350_v46, %v351_v47  ;;  %v469_v46 = vld [vmem:[%s1250_s1 + $0xb0] sm:$0xff] }
  0x1a   :  { %88 = vrot.lane.b32.xlu0 %v85_v51, %s734_s25  ;;  %145 = vrot.lane.b32.xlu2 %v141_v57, %s738_s13  ;;  %v405_v43 = vrot.slane %v915_v37, 1  ;;  %v339_v51 = vrot.slane %v896_v17, 2  ;;  %v428_v53 = vrot.slane %v911_v35, 3  ;;  %v429_v54 = vrot.slane %v915_v37, 3 }
  0x1b   :  { %v364_v56 = vrot.slane %v911_v35, 5  ;;  %v416_v59 = vrot.slane %v911_v35, 2  ;;  %v417_v60 = vrot.slane %v915_v37, 2  ;;  %v307_v61 = vrot.slane %v896_v17, 7 }
  0x1c   :  { %v406_v48 = vsel %vm107_vm4, %v404_v42, %v405_v43  ;;  %v340_v52 = vsel %vm123_vm6, %v338_v50, %v339_v51  ;;  %v430_v58 = vsel %vm139_vm5, %v428_v53, %v429_v54  ;;  %v295_v2 = vrot.slane %v896_v17, 6  ;;  %v453_v42 = vld [vmem:[%s1250_s1 + $0x30] sm:$0xff] }
  0x1d   :  { %209 = vrot.lane.b32.xlu1 %v205_v55, %s737_s4  ;;  %v418_v62 = vsel %vm123_vm6, %v416_v59, %v417_v60  ;;  %v308_v0 = vsel %vm82_vm1, %v306_v15, %v307_v61  ;;  %v385_v4 = vrot.slane %v915_v37, 7  ;;  %v365_v6 = vrot.slane %v915_v37, 5 }
  0x1e   :  { %v296_v3 = vsel %vm66_vm2, %v294_v25, %v295_v2  ;;  %v173_v7 = vrot.slane %v801_v30, 6  ;;  %v57_v10 = vrot.slane %v814_v40, 5  ;;  %v56_v11 = vrot.slane %v811_v39, 5  ;;  %v465_v40 = vld [vmem:[%s1250_s1 + $0x90] sm:$0xff] }
  0x1f   :  { %v386_v5 = vsel %vm82_vm1, %v384_v38, %v385_v4  ;;  %v366_v14 = vsel %vm55_vm3, %v364_v56, %v365_v6  ;;  %v108_v22 = vrot.slane %v811_v39, 1  ;;  %v204_v34 = vrot.slane %v797_v26, 1  ;;  %v447_v4 = vld [vmem:[%s1250_s1] sm:$0xff] }
  0x20   :  { %v58_v16 = vsel %vm55_vm3, %v56_v11, %v57_v10  ;;  %vm78_vm7 = vcmask 261248   ;;  %vm94_vm8 = vcmask 392448   ;;  %vm1252_vm9 = vcmask 516480  }
  0x21   :  { %63 = vst.msk [vmem:[#allocation2 + $0x10] sm:$0xff] %vm1263_vm0, %v58_v16  ;;  %v110_v29 = vsel %vm107_vm4, %v108_v22, %v109_v44  ;;  %v471_v44 = vld [vmem:[%s1250_s1 + $0xc0] sm:$0xff]  ;;  %v206_v50 = vsel %vm107_vm4, %v204_v34, %v205_v55  ;;  %v232_v59 = vrot.slane %v797_v26, 3  ;;  %vm51_vm10 = vcmask 124928  }
  0x22   :  { %129 = vrot.lane.b32.xlu0 %v125_v1, %s739_s18  ;;  %237 = vrot.lane.b32.xlu2 %v233_v8, %s739_s18  ;;  %v467_v55 = vld [vmem:[%s1250_s1 + $0xa0] sm:$0xff]  ;;  %vm61_vm11 = vcmask 130051   ;;  %v218_v2 = vrot.slane %v797_v26, 2  ;;  %vm64_vm12 = vcmask 255104   ;;  %vm80_vm13 = vcmask 385280  }
  0x23   :  { %v234_v61 = vsel %vm139_vm5, %v232_v59, %v233_v8  ;;  %62 = vst.msk [vmem:[#allocation2] sm:$0xf8] %vm61_vm11, %v56_v11  ;;  %vm170_vm14 = vcmask 123904   ;;  %vm102_vm15 = vcmask 523648   ;;  %vm105_vm1 = vcmask 647680  }
  0x24   :  { %vm1253_vm4 = vcmask 653824  }
  0x25   :  { %162 = vrot.lane.b32.xlu1 %v159_v9, %s740_s0  ;;  %v172_v9 = vrot.slane %v797_v26, 6 }
  0x2a   :  { %223 = vrot.lane.b32.xlu0 %v219_v13, %s736_s3  ;;  %317 = vrot.lane.b32.xlu2 %v888_v12, %s737_s4 }
  0x2d   :  { %309 = vrot.lane.b32.xlu1 %v306_v15, %s734_s25  ;;  %v174_v15 = vsel %vm66_vm2, %v172_v9, %v173_v7  ;;  %v376_v7 = vrot.slane %v911_v35, 6 }
  0x2e   :  { %179 = vst.msk [vmem:[#allocation2 + $0x18] sm:$0xff] %vm1263_vm0, %v174_v15 }
  0x32   :  { %297 = vrot.lane.b32.xlu0 %v294_v25, %s735_s26  ;;  %395 = vrot.lane.b32.xlu2 %v911_v35, %s734_s25  ;;  %v474_v25 = vld [vmem:[%s1250_s1 + $0xd8] sm:$0xff] }
  0x33   :  { %669 = vmatpush.msra.mxu3 %v474_v25  ;;  %521 = vmatpush.msra.mxu1 %v474_v25 }
  0x35   :  { %329 = vrot.lane.b32.xlu1 %v328_v36, %s736_s3  ;;  %670 = vmatpush.msra.mxu3 %v473_v27  ;;  %v454_v36 = vld [vmem:[%s1250_s1 + $0x38] sm:$0xff] }
  0x36   :  { %522 = vmatpush.msra.mxu1 %v473_v27 }
  0x3a   :  { %387 = vrot.lane.b32.xlu0 %v384_v38, %s735_s26  ;;  %353 = vrot.lane.b32.xlu2 %v352_v49, %s738_s13  ;;  %v470_v38 = vld [vmem:[%s1250_s1 + $0xb8] sm:$0xff] }
  0x3d   :  { %407 = vrot.lane.b32.xlu1 %v406_v48, %s737_s4  ;;  %v452_v48 = vld [vmem:[%s1250_s1 + $0x28] sm:$0xff] }
  0x42   :  { %341 = vrot.lane.b32.xlu0 %v340_v52, %s739_s18  ;;  %431 = vrot.lane.b32.xlu2 %v430_v58, %s739_s18  ;;  %v124_v52 = vrot.slane %v811_v39, 2  ;;  %v449_v58 = vld [vmem:[%s1250_s1 + $0x10] sm:$0xff] }
  0x45   :  { %367 = vrot.lane.b32.xlu1 %v364_v56, %s740_s0  ;;  %v466_v56 = vld [vmem:[%s1250_s1 + $0x98] sm:$0xff] }
  0x4a   :  { %419 = vrot.lane.b32.xlu0 %v418_v62, %s736_s3  ;;  %319 = vrot.lane.b32.xlu2 %v896_v17, %s737_s4  ;;  %v741_v62 = vmov 0.0  }
  0x4b   :  { %283 = vst.msk [vmem:[#allocation2 + $0x20] sm:$0x7] %vm51_vm10, %v741_v62 }
  0x4c   :  { %52 = vst.msk [vmem:[#allocation2] sm:$0x7] %vm51_vm10, %v741_v62  ;;  %vm1255_vm10 = vcmask 654854  }
  0x4d   :  { %311 = vrot.lane.b32.xlu1 %v308_v0, %s734_s25  ;;  %v464_v0 = vld [vmem:[%s1250_s1 + $0x88] sm:$0xff]  ;;  %293 = vst.msk [vmem:[#allocation2 + $0x20] sm:$0x3] %vm64_vm12, %v741_v62 }
  0x4e   :  { %305 = vst.msk [vmem:[#allocation2 + $0x20] sm:$0x1] %vm80_vm13, %v741_v62 }
  0x4f   :  { %65 = vst.msk [vmem:[#allocation2] sm:$0x3] %vm64_vm12, %v741_v62  ;;  %vm1256_vm12 = vcmask 784000  }
  0x50   :  { %81 = vst.msk [vmem:[#allocation2] sm:$0x1] %vm80_vm13, %v741_v62  ;;  %vm1257_vm13 = vcmask 917253  }
  0x51   :  { %375 = vst.msk [vmem:[#allocation2 + $0x28] sm:$0x3] %vm170_vm14, %v741_v62 }
  0x52   :  { %299 = vrot.lane.b32.xlu0 %v296_v3, %s735_s26  ;;  %397 = vrot.lane.b32.xlu2 %v915_v37, %s734_s25  ;;  %171 = vst.msk [vmem:[#allocation2 + $0x8] sm:$0x3] %vm170_vm14, %v741_v62  ;;  %vm76_vm14 = vcmask 261250  }
  0x55   :  { %331 = vrot.lane.b32.xlu1 %v327_v31, %s736_s3  ;;  %v472_v31 = vld [vmem:[%s1250_s1 + $0xc8] sm:$0xff] }
  0x56   :  { %671 = vmatpush.msra.mxu3 %v472_v31  ;;  %523 = vmatpush.msra.mxu1 %v472_v31 }
  0x58   :  { %672 = vmatpush.msra.mxu3 %v471_v44  ;;  %524 = vmatpush.msra.mxu1 %v471_v44 }
  0x5a   :  { %389 = vrot.lane.b32.xlu0 %v386_v5, %s735_s26  ;;  %355 = vrot.lane.b32.xlu2 %v351_v47, %s738_s13  ;;  %v463_v5 = vld [vmem:[%s1250_s1 + $0x80] sm:$0xff] }
  0x5b   :  { %673 = vmatpush.msra.mxu3 %v470_v38  ;;  %525 = vmatpush.msra.mxu1 %v470_v38 }
  0x5d   :  { %409 = vrot.lane.b32.xlu1 %v405_v43, %s737_s4  ;;  %v140_v43 = vrot.slane %v811_v39, 3  ;;  %674 = vmatpush.msra.mxu3 %v469_v46 }
  0x5e   :  { %526 = vmatpush.msra.mxu1 %v469_v46 }
  0x5f   :  { %v142_v49 = vsel %vm139_vm5, %v140_v43, %v141_v57  ;;  %v126_v57 = vsel %vm123_vm6, %v124_v52, %v125_v1  ;;  %v286_v1 = vrot.slane %v888_v12, 5  ;;  %vm121_vm5 = vcmask 786054  }
  0x60   :  { %v377_v12 = vrot.slane %v915_v37, 6 }
  0x61   :  { %291 = vst.msk [vmem:[#allocation2 + $0x20] sm:$0xf8] %vm61_vm11, %v286_v1  ;;  %vm177_vm11 = vcmask 130050  }
  0x62   :  { %343 = vrot.lane.b32.xlu0 %v339_v51, %s739_s18  ;;  %369 = vrot.lane.b32.xlu2 %v366_v14, %s740_s0  ;;  %v468_v51 = vld [vmem:[%s1250_s1 + $0xa8] sm:$0xff]  ;;  %381 = vst.msk [vmem:[#allocation2 + $0x28] sm:$0xfc] %vm177_vm11, %v376_v7  ;;  %v378_v22 = vsel %vm66_vm2, %v376_v7, %v377_v12  ;;  %vm1266_vm2 = vcmask 653824  }
  0x63   :  { %675 = vmatpush.msra.mxu3 %v468_v51  ;;  %527 = vmatpush.msra.mxu1 %v468_v51  ;;  %178 = vst.msk [vmem:[#allocation2 + $0x8] sm:$0xfc] %vm177_vm11, %v172_v9  ;;  %vm475_vm11 = vcmask 785408  }
  0x64   :  { %v981_v18 = vpop.permute.xlu2 %196  ;;  %382 = vst.msk [vmem:[#allocation2 + $0x38] sm:$0xff] %vm1263_vm0, %v378_v22 }
  0x65   :  { %70 = vrot.lane.b32.xlu1 %v67_v41, %s735_s26  ;;  %v460_v41 = vld [vmem:[%s1250_s1 + $0x68] sm:$0xff]  ;;  %676 = vmatpush.msra.mxu3 %v467_v55 }
  0x66   :  { %655 = vmatpush.msra.mxu2 %v460_v41  ;;  %490 = vmatpush.msra.mxu0 %v460_v41 }
  0x67   :  { %677 = vmatpush.msra.mxu3 %v466_v56  ;;  %528 = vmatpush.msra.mxu1 %v467_v55 }
  0x68   :  { %656 = vmatpush.msra.mxu2 %v459_v21  ;;  %491 = vmatpush.msra.mxu0 %v459_v21 }
  0x69   :  { %678 = vmatpush.msra.mxu3 %v465_v40  ;;  %529 = vmatpush.msra.mxu1 %v466_v56 }
  0x6a   :  { %421 = vrot.lane.b32.xlu0 %v417_v60, %s736_s3  ;;  %96 = vrot.lane.b32.xlu2 %v811_v39, %s737_s4  ;;  %v448_v60 = vld [vmem:[%s1250_s1 + $0x8] sm:$0xff] }
  0x6b   :  { %657 = vmatpush.msra.mxu2 %v458_v24  ;;  %492 = vmatpush.msra.mxu0 %v458_v24 }
  0x6c   :  { %v1002_v23 = vpop.permute.xlu2 %113  ;;  %679 = vmatpush.msra.mxu3 %v464_v0  ;;  %530 = vmatpush.msra.mxu1 %v465_v40 }
  0x6d   :  { %86 = vrot.lane.b32.xlu1 %v83_v45, %s734_s25  ;;  %v457_v45 = vld [vmem:[%s1250_s1 + $0x50] sm:$0xff] }
  0x6e   :  { %658 = vmatpush.msra.mxu2 %v457_v45  ;;  %493 = vmatpush.msra.mxu0 %v457_v45 }
  0x6f   :  { %680 = vmatpush.msra.mxu3 %v463_v5  ;;  %531 = vmatpush.msra.mxu1 %v464_v0 }
  0x70   :  { %659 = vmatpush.msra.mxu2 %v456_v28  ;;  %494 = vmatpush.msra.mxu0 %v456_v28 }
  0x71   :  { %532 = vmatpush.msra.mxu1 %v463_v5 }
  0x72   :  { %433 = vrot.lane.b32.xlu0 %v429_v54, %s739_s18  ;;  %194 = vrot.lane.b32.xlu2 %v797_v26, %s734_s25  ;;  %v450_v54 = vld [vmem:[%s1250_s1 + $0x18] sm:$0xff]  ;;  %v287_v26 = vrot.slane %v896_v17, 5 }
  0x73   :  { %660 = vmatpush.msra.mxu2 %v455_v32  ;;  %495 = vmatpush.msra.mxu0 %v455_v32 }
  0x74   :  { %v1051_v47 = vpop.permute.xlu2 %145 }
  0x75   :  { %111 = vrot.lane.b32.xlu1 %v110_v29, %s736_s3  ;;  %661 = vmatpush.msra.mxu2 %v454_v36 }
  0x76   :  { %496 = vmatpush.msra.mxu0 %v454_v36 }
  0x77   :  { %662 = vmatpush.msra.mxu2 %v453_v42 }
  0x78   :  { %497 = vmatpush.msra.mxu0 %v453_v42 }
  0x79   :  { %663 = vmatpush.msra.mxu2 %v452_v48 }
  0x7a   :  { %185 = vrot.lane.b32.xlu0 %v182_v33, %s735_s26  ;;  %143 = vrot.lane.b32.xlu2 %v142_v49, %s738_s13  ;;  %v451_v33 = vld [vmem:[%s1250_s1 + $0x20] sm:$0xff]  ;;  %s742_s1 = smov [#allocation3]  }
  0x7b   :  { %664 = vmatpush.msra.mxu2 %v451_v33  ;;  %498 = vmatpush.msra.mxu0 %v452_v48 }
  0x7c   :  { %v1110_v3 = vpop.permute.xlu2 %237 }
  0x7d   :  { %207 = vrot.lane.b32.xlu1 %v206_v50, %s737_s4  ;;  %665 = vmatpush.msra.mxu2 %v450_v54 }
  0x7e   :  { %499 = vmatpush.msra.mxu0 %v451_v33 }
  0x7f   :  { %v188_v53 = vpop.permute.xlu1 %187  ;;  %666 = vmatpush.msra.mxu2 %v449_v58 }
  0x80   :  { %193 = vst.msk [vmem:[#allocation2 + $0x18] sm:$0xff] %vm78_vm7, %v188_v53  ;;  %500 = vmatpush.msra.mxu0 %v450_v54 }
  0x81   :  { %201 = vst.msk [vmem:[#allocation2 + $0x18] sm:$0xff] %vm94_vm8, %v981_v18  ;;  %667 = vmatpush.msra.mxu2 %v448_v60  ;;  %v288_v18 = vsel %vm55_vm3, %v286_v1, %v287_v26  ;;  %vm191_vm3 = vcmask 261249  }
  0x82   :  { %127 = vrot.lane.b32.xlu0 %v126_v57, %s739_s18  ;;  %203 = vst.msk [vmem:[#allocation2 + $0x1f] sm:$0x1] %vm1252_vm9, %v741_v62  ;;  %235 = vrot.lane.b32.xlu2 %v234_v61, %s739_s18  ;;  %vm151_vm9 = vcmask 914176  }
  0x83   :  { %668 = vmatpush.msra.mxu2 %v447_v4  ;;  %501 = vmatpush.msra.mxu0 %v449_v58  ;;  %292 = vst.msk [vmem:[#allocation2 + $0x30] sm:$0xff] %vm1263_vm0, %v288_v18  ;;  %vm1267_vm0 = vcmask 516480  }
  0x84   :  { %v73_v8 = vpop.permute.xlu0 %72  ;;  %v318_v39 = vpop.permute.xlu2 %317 }
  0x85   :  { %79 = vst.msk [vmem:[#allocation2 + $0x10] sm:$0xff] %vm78_vm7, %v73_v8  ;;  %160 = vrot.lane.b32.xlu1 %v157_v63, %s740_s0  ;;  %v220_v63 = vsel %vm123_vm6, %v218_v2, %v219_v13  ;;  %502 = vmatpush.msra.mxu0 %v448_v60  ;;  %vm1254_vm6 = vcmask 522624  }
  0x87   :  { %v99_v6 = vpop.permute.xlu1 %98  ;;  %503 = vmatpush.msra.mxu0 %v447_v4 }
  0x8a   :  { %221 = vrot.lane.b32.xlu0 %v220_v63, %s736_s3  ;;  %s627_s3 = sshll.u32 %s742_s1, 4  ;;  %s628_s3 = int_to_ptr.vmem [resolvable:$true] %s627_s3 }
  0x8c   :  { %v89_v30 = vpop.permute.xlu0 %88  ;;  %v396_v11 = vpop.permute.xlu2 %395 }
  0x8d   :  { %95 = vst.msk [vmem:[#allocation2 + $0x10] sm:$0xff] %vm94_vm8, %v89_v30 }
  0x8e   :  { %104 = vst.msk [vmem:[#allocation2 + $0x10] sm:$0xff] %vm102_vm15, %v99_v6 }
  0x8f   :  { %106 = vst.msk [vmem:[#allocation2 + $0x17] sm:$0x1] %vm105_vm1, %v741_v62  ;;  %v210_v13 = vpop.permute.xlu1 %209 }
  0x90   :  { %120 = vst.msk [vmem:[#allocation2 + $0x10] sm:$0x7f] %vm1253_vm4, %v1002_v23  ;;  %vm1262_vm4 = vcmask 1048448  }
  0x91   :  { %122 = vst.msk [vmem:[#allocation2 + $0x10] sm:$0xc0] %vm121_vm5, %v741_v62 }
  0x92   :  { %215 = vst.msk [vmem:[#allocation2 + $0x18] sm:$0x7f] %vm1254_vm6, %v210_v13  ;;  %vm180_vm6 = vcmask 254080  }
  0x93   :  { %217 = vst.msk [vmem:[#allocation2 + $0x18] sm:$0xc0] %vm1255_vm10, %v741_v62  ;;  %vm1261_vm10 = vcmask 652800  }
  0x94   :  { %v130_v10 = vpop.permute.xlu0 %129  ;;  %383 = vst.msk [vmem:[#allocation2 + $0x28] sm:$0x1] %vm180_vm6, %v741_v62  ;;  %v354_v9 = vpop.permute.xlu2 %353 }
  0x95   :  { %136 = vst.msk [vmem:[#allocation2 + $0x10] sm:$0x3f] %vm1256_vm12, %v130_v10  ;;  %vm1258_vm12 = vcmask 786053  }
  0x96   :  { %138 = vst.msk [vmem:[#allocation2 + $0x10] sm:$0xe0] %vm1257_vm13, %v741_v62  ;;  %vm1259_vm13 = vcmask 782976  }
  0x97   :  { %152 = vst.msk [vmem:[#allocation2 + $0x10] sm:$0x1f] %vm151_vm9, %v1051_v47  ;;  %v163_v35 = vpop.permute.xlu1 %162 }
  0x98   :  { %169 = vst.msk [vmem:[#allocation2 + $0x10] sm:$0xff] %vm1262_vm4, %v163_v35  ;;  %vm1264_vm4 = vcmask 1048451  }
  0x99   :  { %181 = vst.msk [vmem:[#allocation2 + $0x8] sm:$0x1] %vm180_vm6, %v741_v62  ;;  %vm1260_vm6 = vcmask 392449  }
  0x9c   :  { %v224_v14 = vpop.permute.xlu0 %223  ;;  %v432_v41 = vpop.permute.xlu2 %431 }
  0x9d   :  { %229 = vst.msk [vmem:[#allocation2 + $0x18] sm:$0x3f] %vm1261_vm10, %v224_v14  ;;  %vm1265_vm10 = vcmask 1043328  }
  0x9e   :  { %231 = vst.msk [vmem:[#allocation2 + $0x18] sm:$0xe0] %vm1258_vm12, %v741_v62  ;;  %vm117_vm12 = vcmask 654848  }
  0x9f   :  { %243 = vst.msk [vmem:[#allocation2 + $0x18] sm:$0x1f] %vm1259_vm13, %v1110_v3  ;;  %v310_v15 = vpop.permute.xlu1 %309  ;;  %v441_v16 = vld [vmem:[#allocation2 + $0x10] sm:$0xff]  ;;  %vm133_vm13 = vcmask 786048  }
  0xa0   :  { %507 = vmatmul.f32.vlgmr.msra.gmra.mxu2 %v441_v16 }
  0xa4   :  { %v298_v19 = vpop.permute.xlu0 %297  ;;  %v320_v37 = vpop.permute.xlu2 %319 }
  0xa5   :  { %303 = vst.msk [vmem:[#allocation2 + $0x20] sm:$0xfc] %vm76_vm14, %v298_v19 }
  0xa6   :  { %315 = vst.msk [vmem:[#allocation2 + $0x20] sm:$0xfe] %vm1260_vm6, %v310_v15  ;;  %v442_v20 = vld [vmem:[#allocation2 + $0x18] sm:$0xff]  ;;  %vm149_vm6 = vcmask 917248  }
  0xa7   :  { %323 = vst.msk [vmem:[#allocation2 + $0x20] sm:$0xff] %vm102_vm15, %v318_v39  ;;  %650 = vmatmul.msk.f32.vlgmr.msra.gmra.mxu3 %vm475_vm11, %v442_v20  ;;  %v330_v17 = vpop.permute.xlu1 %329 }
  0xa8   :  { %335 = vst.msk [vmem:[#allocation2 + $0x20] sm:$0xff] %vm117_vm12, %v330_v17 }
  0xac   :  { %v388_v21 = vpop.permute.xlu0 %387  ;;  %v398_v29 = vpop.permute.xlu2 %397 }
  0xad   :  { %393 = vst.msk [vmem:[#allocation2 + $0x28] sm:$0xfe] %vm191_vm3, %v388_v21 }
  0xae   :  { %401 = vst.msk [vmem:[#allocation2 + $0x28] sm:$0xff] %vm94_vm8, %v396_v11 }
  0xaf   :  { %v408_v23 = vpop.permute.xlu1 %407 }
  0xb0   :  { %413 = vst.msk [vmem:[#allocation2 + $0x28] sm:$0xff] %vm102_vm15, %v408_v23 }
  0xb4   :  { %v342_v24 = vpop.permute.xlu0 %341  ;;  %v356_v34 = vpop.permute.xlu2 %355 }
  0xb5   :  { %347 = vst.msk [vmem:[#allocation2 + $0x20] sm:$0xff] %vm133_vm13, %v342_v24 }
  0xb6   :  { %359 = vst.msk [vmem:[#allocation2 + $0x20] sm:$0xff] %vm149_vm6, %v354_v9 }
  0xb7   :  { %361 = vst.msk [vmem:[#allocation2 + $0x20] sm:$0x7] %vm1265_vm10, %v741_v62  ;;  %v368_v25 = vpop.permute.xlu1 %367  ;;  %vm1269_vm10 = vcmask 654854  }
  0xb8   :  { %373 = vst.msk [vmem:[#allocation2 + $0x20] sm:$0xf8] %vm1264_vm4, %v368_v25  ;;  %vm1268_vm4 = vcmask 522624  }
  0xbc   :  { %v420_v45 = vpop.permute.xlu0 %419  ;;  %v370_v42 = vpop.permute.xlu2 %369 }
  0xbd   :  { %425 = vst.msk [vmem:[#allocation2 + $0x28] sm:$0xff] %vm117_vm12, %v420_v45 }
  0xbe   :  { %437 = vst.msk [vmem:[#allocation2 + $0x28] sm:$0xff] %vm133_vm13, %v432_v41 }
  0xbf   :  { %v312_v27 = vpop.permute.xlu1 %311  ;;  %v443_v28 = vld [vmem:[#allocation2 + $0x20] sm:$0xff] }
  0xc0   :  { %510 = vmatmul.f32.gmra.mxu2 %v443_v28 }
  0xc4   :  { %v300_v31 = vpop.permute.xlu0 %299  ;;  %v97_v48 = vpop.permute.xlu2 %96 }
  0xc5   :  { %304 = vst.msk [vmem:[#allocation2 + $0x30] sm:$0xff] %vm78_vm7, %v300_v31  ;;  %v444_v32 = vld [vmem:[#allocation2 + $0x28] sm:$0xff] }
  0xc6   :  { %316 = vst.msk [vmem:[#allocation2 + $0x30] sm:$0xff] %vm94_vm8, %v312_v27  ;;  %651 = vmatmul.msk.f32.gmra.mxu3 %vm475_vm11, %v444_v32 }
  0xc7   :  { %324 = vst.msk [vmem:[#allocation2 + $0x30] sm:$0xff] %vm102_vm15, %v320_v37  ;;  %v332_v44 = vpop.permute.xlu1 %331 }
  0xc8   :  { %325 = vst.msk [vmem:[#allocation2 + $0x37] sm:$0x1] %vm105_vm1, %v741_v62  ;;  %vm1270_vm1 = vcmask 784000  }
  0xc9   :  { %336 = vst.msk [vmem:[#allocation2 + $0x30] sm:$0x7f] %vm1266_vm2, %v332_v44  ;;  %vm1278_vm2 = vcmask 1048451  }
  0xca   :  { %337 = vst.msk [vmem:[#allocation2 + $0x30] sm:$0xc0] %vm121_vm5, %v741_v62  ;;  %vm1271_vm5 = vcmask 917253  }
  0xcc   :  { %v390_v36 = vpop.permute.xlu0 %389  ;;  %v195_v52 = vpop.permute.xlu2 %194 }
  0xcd   :  { %394 = vst.msk [vmem:[#allocation2 + $0x38] sm:$0xff] %vm78_vm7, %v390_v36  ;;  %vm1272_vm7 = vcmask 1048448  }
  0xce   :  { %402 = vst.msk [vmem:[#allocation2 + $0x38] sm:$0xff] %vm94_vm8, %v398_v29 }
  0xcf   :  { %403 = vst.msk [vmem:[#allocation2 + $0x3f] sm:$0x1] %vm1267_vm0, %v741_v62  ;;  %v410_v38 = vpop.permute.xlu1 %409  ;;  %vm1273_vm0 = vcmask 652800  }
  0xd0   :  { %414 = vst.msk [vmem:[#allocation2 + $0x38] sm:$0x7f] %vm1268_vm4, %v410_v38  ;;  %vm1274_vm4 = vcmask 786053  }
  0xd1   :  { %415 = vst.msk [vmem:[#allocation2 + $0x38] sm:$0xc0] %vm1269_vm10, %v741_v62  ;;  %vm1275_vm10 = vcmask 392449  }
  0xd4   :  { %v344_v43 = vpop.permute.xlu0 %343  ;;  %v144_v54 = vpop.permute.xlu2 %143 }
  0xd5   :  { %348 = vst.msk [vmem:[#allocation2 + $0x30] sm:$0x3f] %vm1270_vm1, %v344_v43 }
  0xd6   :  { %349 = vst.msk [vmem:[#allocation2 + $0x30] sm:$0xe0] %vm1271_vm5, %v741_v62 }
  0xd7   :  { %360 = vst.msk [vmem:[#allocation2 + $0x30] sm:$0x1f] %vm151_vm9, %v356_v34  ;;  %v71_v46 = vpop.permute.xlu1 %70  ;;  %vm1276_vm9 = vcmask 782976  }
  0xd8   :  { %77 = vst.msk [vmem:[#allocation2] sm:$0xfc] %vm76_vm14, %v71_v46  ;;  %vm1277_vm14 = vcmask 1043328  }
  0xd9   :  { %374 = vst.msk [vmem:[#allocation2 + $0x30] sm:$0xff] %vm1272_vm7, %v370_v42 }
  0xdc   :  { %v422_v47 = vpop.permute.xlu0 %421  ;;  %v236_v59 = vpop.permute.xlu2 %235 }
  0xdd   :  { %426 = vst.msk [vmem:[#allocation2 + $0x38] sm:$0x3f] %vm1273_vm0, %v422_v47 }
  0xde   :  { %427 = vst.msk [vmem:[#allocation2 + $0x38] sm:$0xe0] %vm1274_vm4, %v741_v62 }
  0xdf   :  { %v87_v49 = vpop.permute.xlu1 %86 }
  0xe0   :  { %93 = vst.msk [vmem:[#allocation2] sm:$0xfe] %vm1275_vm10, %v87_v49  ;;  %v445_v50 = vld [vmem:[#allocation2 + $0x30] sm:$0xff] }
  0xe1   :  { %103 = vst.msk [vmem:[#allocation2] sm:$0xff] %vm102_vm15, %v97_v48  ;;  %513 = vmatmul.f32.gmra.mxu2 %v445_v50 }
  0xe4   :  { %v434_v51 = vpop.permute.xlu0 %433 }
  0xe5   :  { %438 = vst.msk [vmem:[#allocation2 + $0x38] sm:$0x1f] %vm1276_vm9, %v434_v51 }
  0xe7   :  { %v112_v33 = vpop.permute.xlu1 %111 }
  0xe8   :  { %118 = vst.msk [vmem:[#allocation2] sm:$0xff] %vm117_vm12, %v112_v33 }
  0xec   :  { %v186_v55 = vpop.permute.xlu0 %185  ;;  %v446_v57 = vld [vmem:[#allocation2 + $0x38] sm:$0xff] }
  0xed   :  { %192 = vst.msk [vmem:[#allocation2 + $0x8] sm:$0xfe] %vm191_vm3, %v186_v55  ;;  %652 = vmatmul.msk.f32.gmra.mxu3 %vm475_vm11, %v446_v57 }
  0xee   :  { %200 = vst.msk [vmem:[#allocation2 + $0x8] sm:$0xff] %vm94_vm8, %v195_v52 }
  0xef   :  { %v208_v53 = vpop.permute.xlu1 %207 }
  0xf0   :  { %213 = vst.msk [vmem:[#allocation2 + $0x8] sm:$0xff] %vm102_vm15, %v208_v53 }
  0xf4   :  { %v128_v56 = vpop.permute.xlu0 %127 }
  0xf5   :  { %134 = vst.msk [vmem:[#allocation2] sm:$0xff] %vm133_vm13, %v128_v56 }
  0xf6   :  { %150 = vst.msk [vmem:[#allocation2] sm:$0xff] %vm149_vm6, %v144_v54  ;;  %vm1279_vm6 = vcmask 130048  }
  0xf7   :  { %154 = vst.msk [vmem:[#allocation2] sm:$0x7] %vm1277_vm14, %v741_v62  ;;  %v161_v58 = vpop.permute.xlu1 %160  ;;  %vm1280_vm7 = vmmov %vm1279_vm6 }
  0xf8   :  { %167 = vst.msk [vmem:[#allocation2] sm:$0xf8] %vm1278_vm2, %v161_v58  ;;  %vm1281_vm14 = vmmov %vm1279_vm6 }
  0xfc   :  { %v222_v40 = vpop.permute.xlu0 %221 }
  0xfd   :  { %227 = vst.msk [vmem:[#allocation2 + $0x8] sm:$0xff] %vm117_vm12, %v222_v40 }
  0xfe   :  { %241 = vst.msk [vmem:[#allocation2 + $0x8] sm:$0xff] %vm133_vm13, %v236_v59 }
  0xff   :  { %v439_v1 = vld [vmem:[#allocation2] sm:$0xff] }
 0x100   :  { %504 = vmatmul.f32.vlgmr.msra.gmra.mxu0 %v439_v1 }
 0x105   :  { %v440_v60 = vld [vmem:[#allocation2 + $0x8] sm:$0xff] }
 0x106   :  { %649 = vmatmul.msk.f32.vlgmr.msra.gmra.mxu1 %vm475_vm11, %v440_v60 }
 0x123   :  { %v508_v61 = vpop.f32.mrf.mxu2 }
 0x12a   :  { %v537_v0 = vpop.f32.mrf.mxu3 }
 0x12b   :  { %v538_v2 = vadd.f32 %v537_v0, %v508_v61 }
 0x12d   :  { %v547_v3 = vsub.f32 0.0, %v538_v2 }
 0x12f   :  { %v552_v8 = vmul.f32 1.442695, %v547_v3 }
 0x131   :  { %692 = vpow2.f32 %v552_v8 }
 0x137   :  { %v693_v62 = vpop.eup %692 }
 0x138   :  { %v559_v4 = vadd.f32 1.0, %v693_v62 }
 0x13a   :  { %694 = vrcp.f32 %v559_v4  ;;  %v587_v30 = vand.u32 2147483648, %v559_v4  ;;  %v585_v13 = vand.u32 2147483647, %v559_v4  ;;  %vm581_vm15 = vweird.f32 %v559_v4 }
 0x13c   :  { %v588_v35 = vor.u32 1.1754944e-38, %v587_v30  ;;  %vm586_vm13 = vcmp.eq.f32.partialorder %v585_v13, 8.507059e+37 }
 0x140   :  { %v695_v5 = vpop.eup %694 }
 0x141   :  { %v577_v63 = vmul.f32 %v695_v5, %v559_v4  ;;  %vm582_vm8 = vweird.f32 %v695_v5 }
 0x142   :  { %vm583_vm12 = vmor %vm581_vm15, %vm582_vm8 }
 0x143   :  { %v578_v6 = vsub.f32 1.0, %v577_v63  ;;  %v511_v10 = vpop.f32.mrf.mxu2 }
 0x145   :  { %v579_v39 = vmul.f32 %v695_v5, %v578_v6 }
 0x147   :  { %v580_v7 = vadd.f32 %v695_v5, %v579_v39 }
 0x149   :  { %v584_v11 = vsel %vm583_vm12, %v695_v5, %v580_v7  ;;  %v540_v14 = vpop.f32.mrf.mxu3 }
 0x14a   :  { %v589_v15 = vsel %vm586_vm13, %v588_v35, %v584_v11  ;;  %v541_v16 = vadd.f32 %v540_v14, %v511_v10  ;;  %vm1282_vm13 = vmmov %vm1279_vm6 }
 0x14b   :  { %619 = vst.msk [vmem:[#allocation3 + $0x8] sm:$0xff] %vm1279_vm6, %v589_v15 }
 0x14c   :  { %v548_v26 = vsub.f32 0.0, %v541_v16 }
 0x14e   :  { %v554_v9 = vmul.f32 1.442695, %v548_v26 }
 0x150   :  { %696 = vpow2.f32 %v554_v9 }
 0x156   :  { %v697_v18 = vpop.eup %696 }
 0x157   :  { %v560_v19 = vadd.f32 1.0, %v697_v18 }
 0x159   :  { %698 = vrcp.f32 %v560_v19  ;;  %v601_v41 = vand.u32 2147483648, %v560_v19  ;;  %v599_v22 = vand.u32 2147483647, %v560_v19  ;;  %vm595_vm3 = vweird.f32 %v560_v19 }
 0x15b   :  { %v602_v24 = vor.u32 1.1754944e-38, %v601_v41  ;;  %vm600_vm5 = vcmp.eq.f32.partialorder %v599_v22, 8.507059e+37 }
 0x15f   :  { %v699_v20 = vpop.eup %698 }
 0x160   :  { %v591_v17 = vmul.f32 %v699_v20, %v560_v19  ;;  %vm596_vm11 = vweird.f32 %v699_v20 }
 0x161   :  { %vm597_vm1 = vmor %vm595_vm3, %vm596_vm11 }
 0x162   :  { %v592_v12 = vsub.f32 1.0, %v591_v17 }
 0x164   :  { %v593_v21 = vmul.f32 %v699_v20, %v592_v12  ;;  %v514_v45 = vpop.f32.mrf.mxu2 }
 0x166   :  { %v594_v23 = vadd.f32 %v699_v20, %v593_v21 }
 0x168   :  { %v598_v37 = vsel %vm597_vm1, %v699_v20, %v594_v23 }
 0x169   :  { %v603_v25 = vsel %vm600_vm5, %v602_v24, %v598_v37 }
 0x16a   :  { %621 = vst.msk [vmem:[#allocation3 + $0x10] sm:$0xff] %vm1280_vm7, %v603_v25 }
 0x170   :  { %v543_v27 = vpop.f32.mrf.mxu3 }
 0x171   :  { %v544_v28 = vadd.f32 %v543_v27, %v514_v45 }
 0x173   :  { %v549_v29 = vsub.f32 0.0, %v544_v28 }
 0x175   :  { %v556_v31 = vmul.f32 1.442695, %v549_v29 }
 0x177   :  { %700 = vpow2.f32 %v556_v31 }
 0x17d   :  { %v701_v32 = vpop.eup %700  ;;  %v505_v34 = vpop.f32.mrf.mxu0 }
 0x17e   :  { %v561_v44 = vadd.f32 1.0, %v701_v32 }
 0x180   :  { %702 = vrcp.f32 %v561_v44  ;;  %v615_v49 = vand.u32 2147483648, %v561_v44  ;;  %v613_v51 = vand.u32 2147483647, %v561_v44  ;;  %vm609_vm4 = vweird.f32 %v561_v44 }
 0x182   :  { %v616_v33 = vor.u32 1.1754944e-38, %v615_v49  ;;  %vm614_vm9 = vcmp.eq.f32.partialorder %v613_v51, 8.507059e+37 }
 0x183   :  { %v534_v36 = vpop.f32.mrf.mxu1 }
 0x184   :  { %v535_v38 = vadd.f32 %v534_v36, %v505_v34 }
 0x186   :  { %v703_v42 = vpop.eup %702  ;;  %v546_v43 = vsub.f32 0.0, %v535_v38 }
 0x187   :  { %v605_v46 = vmul.f32 %v703_v42, %v561_v44  ;;  %vm610_vm0 = vweird.f32 %v703_v42 }
 0x188   :  { %v550_v47 = vmul.f32 1.442695, %v546_v43  ;;  %vm611_vm10 = vmor %vm609_vm4, %vm610_vm0 }
 0x189   :  { %v606_v48 = vsub.f32 1.0, %v605_v46 }
 0x18a   :  { %704 = vpow2.f32 %v550_v47 }
 0x18b   :  { %v607_v50 = vmul.f32 %v703_v42, %v606_v48 }
 0x18d   :  { %v608_v52 = vadd.f32 %v703_v42, %v607_v50 }
 0x18f   :  { %v612_v55 = vsel %vm611_vm10, %v703_v42, %v608_v52 }
 0x190   :  { %v705_v57 = vpop.eup %704  ;;  %v617_v53 = vsel %vm614_vm9, %v616_v33, %v612_v55 }
 0x191   :  { %622 = vst.msk [vmem:[#allocation3 + $0x18] sm:$0xff] %vm1281_vm14, %v617_v53  ;;  %v558_v54 = vadd.f32 1.0, %v705_v57 }
 0x193   :  { %706 = vrcp.f32 %v558_v54  ;;  %v573_v40 = vand.u32 2147483648, %v558_v54  ;;  %v571_v60 = vand.u32 2147483647, %v558_v54  ;;  %vm567_vm8 = vweird.f32 %v558_v54 }
 0x195   :  { %v574_v0 = vor.u32 1.1754944e-38, %v573_v40  ;;  %vm572_vm12 = vcmp.eq.f32.partialorder %v571_v60, 8.507059e+37 }
 0x199   :  { %v707_v56 = vpop.eup %706 }
 0x19a   :  { %v563_v58 = vmul.f32 %v707_v56, %v558_v54  ;;  %vm568_vm2 = vweird.f32 %v707_v56 }
 0x19b   :  { %vm569_vm15 = vmor %vm567_vm8, %vm568_vm2 }
 0x19c   :  { %v564_v59 = vsub.f32 1.0, %v563_v58 }
 0x19e   :  { %v565_v1 = vmul.f32 %v707_v56, %v564_v59 }
 0x1a0   :  { %v566_v61 = vadd.f32 %v707_v56, %v565_v1 }
 0x1a2   :  { %v570_v2 = vsel %vm569_vm15, %v707_v56, %v566_v61 }
 0x1a3   :  { %v575_v3 = vsel %vm572_vm12, %v574_v0, %v570_v2 }
 0x1a4   :  { %618 = vst.msk [vmem:[#allocation3] sm:$0xff] %vm1282_vm13, %v575_v3 }
 0x1a5   :  { %635 = dma.vmem_to_hbm [thread:$0]  %s628_s3, 512, %s630_s28, [#allocation4], %s743_s29, %s743_s29, %s744_s30  }
 0x1a6   :  { %732 = dma.done.wait [#allocation4], 512  }
 0x1a7   :  { %733 = vsyncadd [#allocation4], 4294966784 }
 0x1a8   :  { %640 = vsyncpa [#allocation4], 1 }

</bundles_post_ra>
